<compile_context>
chip_gen: v6e
topology: v6e:2x2x1
jax: 0.10.0
libtpu: 0.0.40
codegen_flags: <defaults>
</compile_context>

<pallas_src>
import functools

import jax
import jax.numpy as jnp
from jax.experimental import pallas as pl
from jax.experimental.pallas import tpu as pltpu


def _router_kernel(x1_ref, x2_ref, w_ref, b_ref, s_ref, o_ref, acc_ref, *,
                   c1, cout, n_phase):
    """Fused 1x1 conv (BN folded) + bias + LeakyReLU + reorg + concat.

    x1_ref : (C1, Ho*Wo)            passthrough channels (concat head)
    x2_ref : (ck, H*W)              cin-tile of the native-layout input image
    w_ref  : (Cout, ck)             cin-tile of the BN-folded conv weight
    b_ref  : (Cout, 1)              folded BN bias
    s_ref  : (s*s, H*W, Ho*Wo)      constant 0/1 spatial selection matrices
    o_ref  : (C1 + s*s*Cout, Ho*Wo) final NCHW output (spatial flattened)
    acc_ref: (Cout, H*W) f32        conv accumulator across cin tiles
    """
    k = pl.program_id(1)

    @pl.when(k == 0)
    def _():
        acc_ref[...] = jnp.zeros_like(acc_ref)

    # Partial 1x1 conv over this cin tile: (cout, ck) @ (ck, hw) -> (cout, hw).
    acc_ref[...] += jnp.dot(w_ref[...].astype(jnp.float32),
                            x2_ref[...].astype(jnp.float32),
                            preferred_element_type=jnp.float32)

    @pl.when(k == pl.num_programs(1) - 1)
    def _():
        # Concat: x1 goes straight into the channel head of the output slab.
        o_ref[0:c1, :] = x1_ref[...].astype(o_ref.dtype)

        # Folded-BN bias + LeakyReLU(0.1), applied ONCE (hoisted out of the
        # phase loop -- JAX does not CSE broadcast_in_dim).
        y = acc_ref[...] + b_ref[...].astype(jnp.float32)
        y = jnp.where(y > 0, y, 0.1 * y)

        # Space-to-depth on the (otherwise idle) MXU: S_p is a 0/1 column
        # selection matrix, so y @ S_p is an exact spatial permutation of y.
        for p in range(n_phase):
            yp = jnp.dot(y, s_ref[p].astype(jnp.float32),
                         preferred_element_type=jnp.float32)
            o_ref[c1 + p * cout: c1 + (p + 1) * cout, :] = yp.astype(o_ref.dtype)


def _pick_cin_tile(cin, hw, itemsize, budget_bytes):
    """Largest divisor of cin whose (ck, hw) x2 block fits the byte budget."""
    best = 1
    for d in range(1, cin + 1):
        if cin % d == 0 and d * hw * itemsize <= budget_bytes:
            best = d
    return best


def _vmem_cap_bytes():
    """Generation-aware scoped-VMEM cap (leave headroom below physical VMEM)."""
    try:
        return int(0.75 * pltpu.get_tpu_info().vmem_capacity_bytes)
    except Exception:
        return 48 * 1024 * 1024


def router_v2_forward(x1, x2, w_folded, bias, *, stride=2,
                      ck_budget_bytes=512 * 1024):
    """x1: (B,C1,H//s,W//s), x2: (B,Cin,H,W) NCHW -> (B, C1+s*s*Cout, H//s, W//s)."""
    B, cin, H, W = x2.shape
    Bx, c1, Ho, Wo = x1.shape
    s = stride
    assert Bx == B and H == Ho * s and W == Wo * s, (x1.shape, x2.shape, s)
    cout = w_folded.shape[0]
    n_phase = s * s
    hw, hw_o = H * W, Ho * Wo
    ctot = c1 + n_phase * cout

    # --- cin tiling (pipelining + bounded per-step VMEM); all x views are free.
    itemsize = jnp.dtype(x2.dtype).itemsize
    ck = _pick_cin_tile(cin, hw, itemsize, ck_budget_bytes)
    n_k = cin // ck
    x2v = x2.reshape(B, n_k, ck, hw)                     # free view of NCHW
    x1f = x1.reshape(B, c1, hw_o)                        # free view
    w3 = jnp.transpose(w_folded.reshape(cout, n_k, ck), (1, 0, 2))   # tiny
    bias2 = jnp.reshape(bias, (cout, 1)).astype(jnp.float32)

    # --- constant 0/1 selection matrices for the PyTorch reorg order ---------
    # S[p, i, j] = 1  iff  i == (hh*s+sh)*W + (ww*s+sw),  with p = sh*s+sw and
    # j = hh*Wo+ww.  Constant-folded under jit; fetched once per call.
    ii = jnp.arange(hw, dtype=jnp.int32)[:, None]
    hh = jnp.arange(Ho, dtype=jnp.int32)[:, None]
    ww = jnp.arange(Wo, dtype=jnp.int32)[None, :]
    sel = []
    for sh in range(s):
        for sw in range(s):
            src = ((hh * s + sh) * W + (ww * s + sw)).reshape(1, hw_o)
            sel.append((ii == src).astype(jnp.float32))
    S = jnp.stack(sel, axis=0)                           # (n_phase, hw, hw_o)

    # --- VMEM budget: itemsize-aware estimate, generation-aware cap ----------
    out_itemsize = jnp.dtype(x1.dtype).itemsize
    step_bytes = (2 * (c1 * hw_o * itemsize              # x1   (double-buffered)
                       + ck * hw * itemsize              # x2 tile
                       + cout * ck * 4 + cout * 4        # w tile + bias
                       + n_phase * hw * hw_o * 4         # S (resident)
                       + ctot * hw_o * out_itemsize)     # out
                  + cout * hw * 4)                       # accumulator scratch
    cp_kwargs = dict(dimension_semantics=("parallel", "arbitrary"))
    if step_bytes > 12 * 1024 * 1024:    # below v5e's 16 MiB default scoped VMEM
        cp_kwargs["vmem_limit_bytes"] = min(int(step_bytes * 1.25), _vmem_cap_bytes())

    kernel = functools.partial(_router_kernel, c1=c1, cout=cout, n_phase=n_phase)
    out = pl.pallas_call(
        kernel,
        out_shape=jax.ShapeDtypeStruct((B, ctot, hw_o), x1.dtype),
        grid_spec=pltpu.PrefetchScalarGridSpec(
            num_scalar_prefetch=0,
            grid=(B, n_k),                               # batch x cin-tiles
            in_specs=[
                pl.BlockSpec((None, c1, hw_o), lambda b, k: (b, 0, 0)),
                pl.BlockSpec((None, None, ck, hw), lambda b, k: (b, k, 0, 0)),
                pl.BlockSpec((None, cout, ck), lambda b, k: (k, 0, 0)),
                pl.BlockSpec((cout, 1), lambda b, k: (0, 0)),
                pl.BlockSpec((n_phase, hw, hw_o), lambda b, k: (0, 0, 0)),
            ],
            out_specs=pl.BlockSpec((None, ctot, hw_o), lambda b, k: (b, 0, 0)),
            scratch_shapes=[pltpu.VMEM((cout, hw), jnp.float32)],
        ),
        compiler_params=pltpu.CompilerParams(**cp_kwargs),
    )(x1f, x2v, w3, bias2, S)
    return out.reshape(B, ctot, Ho, Wo)                  # free view


def make_params(key, inp, oup):
    """Deterministic synthetic Conv2d(1x1, no bias) + BatchNorm2d parameters."""
    k_w, k_g, k_b, k_m, k_v = jax.random.split(key, 5)
    w = jax.random.normal(k_w, (oup, inp), jnp.float32) * 0.1     # (oup, inp, 1, 1) squeezed
    gamma = 1.0 + 0.1 * jax.random.normal(k_g, (oup,), jnp.float32)
    beta = 0.1 * jax.random.normal(k_b, (oup,), jnp.float32)
    mean = 0.1 * jax.random.normal(k_m, (oup,), jnp.float32)
    var = jnp.abs(1.0 + 0.1 * jax.random.normal(k_v, (oup,), jnp.float32))
    return w, gamma, beta, mean, var


def fold_conv_bn(w, gamma, beta, mean, var, eps=1e-5):
    """Fold eval-mode BN into the 1x1 conv: y = (w*scale) @ x + bias."""
    scale = gamma / jnp.sqrt(var + eps)
    return w * scale[:, None], beta - mean * scale


def _reference(x1, x2, w, gamma, beta, mean, var, eps=1e-5, stride=2):
    """Pure-JAX reference mirroring the PyTorch module."""
    scale = gamma / jnp.sqrt(var + eps)
    bias = beta - mean * scale
    y = jnp.einsum("bchw,oc->bohw", x2, w)
    y = y * scale[None, :, None, None] + bias[None, :, None, None]
    y = jnp.where(y > 0, y, 0.1 * y)
    B, C, H, W = y.shape
    s = stride
    y = y.reshape(B, C, H // s, s, W // s, s)
    y = jnp.transpose(y, (0, 3, 5, 1, 2, 4))        # (b, sh, sw, c, hh, ww)
    y = y.reshape(B, s * s * C, H // s, W // s)
    return jnp.concatenate([x1, y], axis=1)


if __name__ == "__main__":
    key = jax.random.PRNGKey(0)

    def run_case(k, B, inp, oup, H, W, s, C1, ck_budget_bytes):
        k1, k2, kp = jax.random.split(k, 3)
        x1 = jax.random.normal(k1, (B, C1, H // s, W // s), jnp.float32)
        x2 = jax.random.normal(k2, (B, inp, H, W), jnp.float32)
        w, gamma, beta, mean, var = make_params(kp, inp, oup)
        w_folded, bias = fold_conv_bn(w, gamma, beta, mean, var)
        fwd = jax.jit(functools.partial(router_v2_forward, stride=s,
                                        ck_budget_bytes=ck_budget_bytes))
        out = jax.block_until_ready(fwd(x1, x2, w_folded, bias))
        expected_shape = (B, C1 + s * s * oup, H // s, W // s)
        assert out.shape == expected_shape, (out.shape, expected_shape)
        ref = _reference(x1, x2, w, gamma, beta, mean, var, stride=s)
        max_err = float(jnp.max(jnp.abs(out - ref)))
        assert jnp.allclose(out, ref, atol=1e-4, rtol=1e-4), f"mismatch, max_err={max_err}"

    ka, kb = jax.random.split(key)
    # Small router-like case (single cin tile, B>1 pipelining over batch).
    run_case(ka, B=2, inp=4, oup=8, H=16, W=16, s=2, C1=16,
             ck_budget_bytes=512 * 1024)
    # Tiny budget forces cin tiling (ck=8, n_k=4) to exercise the
    # accumulate-across-k / finalize-on-last-k path at B=1.
    run_case(kb, B=1, inp=32, oup=8, H=8, W=8, s=2, C1=8,
             ck_budget_bytes=2048)

    print("KERNEL_OK")
</pallas_src>

<mosaic_0001>
module attributes {stable_mosaic.version = 11 : i64} {
  func.func @_router_kernel(%arg0: i32, %arg1: i32, %arg2: memref<1x16x64xf32, #tpu.memory_space<vmem>>, %arg3: memref<1x1x4x256xf32, #tpu.memory_space<vmem>>, %arg4: memref<1x8x4xf32, #tpu.memory_space<vmem>>, %arg5: memref<8x1xf32, #tpu.memory_space<vmem>>, %arg6: memref<4x256x64xf32, #tpu.memory_space<vmem>>, %arg7: memref<1x48x64xf32, #tpu.memory_space<vmem>>, %arg8: memref<8x256xf32, #tpu.memory_space<vmem>>) attributes {dimension_semantics = [#tpu.dimension_semantics<parallel>, #tpu.dimension_semantics<arbitrary>], iteration_bounds = array<i64: 2, 1>, scalar_prefetch = 0 : i64, scratch_operands = 1 : i64, tpu.core_type = #tpu.core_type<tc>, window_params = [{transform_indices = @transform_0, window_bounds = array<i64: 1, 16, 64>}, {transform_indices = @transform_1, window_bounds = array<i64: 1, 1, 4, 256>}, {transform_indices = @transform_2, window_bounds = array<i64: 1, 8, 4>}, {pipeline_mode = #tpu.pipeline_mode<synchronous>, transform_indices = @transform_3, window_bounds = array<i64: 8, 1>}, {pipeline_mode = #tpu.pipeline_mode<synchronous>, transform_indices = @transform_4, window_bounds = array<i64: 4, 256, 64>}, {transform_indices = @transform_5, window_bounds = array<i64: 1, 48, 64>}]} {
    %c0_i32 = arith.constant 0 : i32
    %0 = arith.cmpi eq, %arg1, %c0_i32 : i32
    %1 = arith.extui %0 : i1 to i32
    %c0_i32_0 = arith.constant 0 : i32
    %2 = arith.cmpi ne, %1, %c0_i32_0 : i32
    scf.if %2 {
      %cst_13 = arith.constant 0.000000e+00 : f32
      %14 = vector.broadcast %cst_13 : f32 to vector<8x256xf32>
      %c0_14 = arith.constant 0 : index
      %c0_15 = arith.constant 0 : index
      %15 = vector.load %arg8[%c0_14, %c0_15] : memref<8x256xf32, #tpu.memory_space<vmem>>, vector<8x256xf32>
      tpu.vector_store %arg8[%c0_14, %c0_15], %14 {strides = array<i32>} : memref<8x256xf32, #tpu.memory_space<vmem>>, vector<8x256xf32>,
    } else {
    }
    %c0 = arith.constant 0 : index
    %c0_1 = arith.constant 0 : index
    %3 = vector.load %arg8[%c0, %c0_1] : memref<8x256xf32, #tpu.memory_space<vmem>>, vector<8x256xf32>
    %c0_2 = arith.constant 0 : index
    %c0_3 = arith.constant 0 : index
    %c0_4 = arith.constant 0 : index
    %4 = vector.load %arg4[%c0_2, %c0_3, %c0_4] : memref<1x8x4xf32, #tpu.memory_space<vmem>>, vector<1x8x4xf32>
    %5 = vector.shape_cast %4 : vector<1x8x4xf32> to vector<8x4xf32>
    %c0_5 = arith.constant 0 : index
    %c0_6 = arith.constant 0 : index
    %c0_7 = arith.constant 0 : index
    %c0_8 = arith.constant 0 : index
    %6 = vector.load %arg3[%c0_5, %c0_6, %c0_7, %c0_8] : memref<1x1x4x256xf32, #tpu.memory_space<vmem>>, vector<1x1x4x256xf32>
    %7 = vector.shape_cast %6 : vector<1x1x4x256xf32> to vector<4x256xf32>
    %cst = arith.constant dense<0.000000e+00> : vector<8x256xf32>
    %8 = tpu.matmul %5, %7, %cst {dimension_numbers = #tpu.dot_dimension_numbers<[1], [0], [0], [1], [0, 0, 1, 1], [], []>} : vector<8x4xf32>, vector<4x256xf32>, vector<8x256xf32> -> vector<8x256xf32>
    %9 = arith.addf %3, %8 : vector<8x256xf32>
    %c0_9 = arith.constant 0 : index
    %c0_10 = arith.constant 0 : index
    %10 = vector.load %arg8[%c0_9, %c0_10] : memref<8x256xf32, #tpu.memory_space<vmem>>, vector<8x256xf32>
    tpu.vector_store %arg8[%c0_9, %c0_10], %9 {strides = array<i32>} : memref<8x256xf32, #tpu.memory_space<vmem>>, vector<8x256xf32>,
    %c0_i32_11 = arith.constant 0 : i32
    %11 = arith.cmpi eq, %arg1, %c0_i32_11 : i32
    %12 = arith.extui %11 : i1 to i32
    %c0_i32_12 = arith.constant 0 : i32
    %13 = arith.cmpi ne, %12, %c0_i32_12 : i32
    scf.if %13 {
      %c0_13 = arith.constant 0 : index
      %c0_14 = arith.constant 0 : index
      %c0_15 = arith.constant 0 : index
      %14 = vector.load %arg2[%c0_13, %c0_14, %c0_15] : memref<1x16x64xf32, #tpu.memory_space<vmem>>, vector<1x16x64xf32>
      %15 = vector.shape_cast %14 : vector<1x16x64xf32> to vector<16x64xf32>
      %c0_16 = arith.constant 0 : index
      %c0_17 = arith.constant 0 : index
      %c0_18 = arith.constant 0 : index
      %16 = vector.load %arg7[%c0_16, %c0_17, %c0_18] : memref<1x48x64xf32, #tpu.memory_space<vmem>>, vector<1x16x64xf32>
      %17 = vector.shape_cast %16 : vector<1x16x64xf32> to vector<16x64xf32>
      %18 = vector.shape_cast %15 : vector<16x64xf32> to vector<1x16x64xf32>
      tpu.vector_store %arg7[%c0_16, %c0_17, %c0_18], %18 {strides = array<i32>} : memref<1x48x64xf32, #tpu.memory_space<vmem>>, vector<1x16x64xf32>,
      %c0_19 = arith.constant 0 : index
      %c0_20 = arith.constant 0 : index
      %19 = vector.load %arg8[%c0_19, %c0_20] : memref<8x256xf32, #tpu.memory_space<vmem>>, vector<8x256xf32>
      %c0_21 = arith.constant 0 : index
      %c0_22 = arith.constant 0 : index
      %20 = vector.load %arg5[%c0_21, %c0_22] : memref<8x1xf32, #tpu.memory_space<vmem>>, vector<8x1xf32>
      %21 = vector.broadcast %20 : vector<8x1xf32> to vector<8x256xf32>
      %22 = arith.addf %19, %21 : vector<8x256xf32>
      %cst_23 = arith.constant 0.000000e+00 : f32
      %23 = vector.broadcast %cst_23 : f32 to vector<8x256xf32>
      %24 = arith.cmpf ogt, %22, %23 : vector<8x256xf32>
      %cst_24 = arith.constant 1.000000e-01 : f32
      %25 = vector.broadcast %cst_24 : f32 to vector<8x256xf32>
      %26 = arith.mulf %25, %22 : vector<8x256xf32>
      %27 = arith.select %24, %22, %26 : vector<8x256xi1>, vector<8x256xf32>
      %c0_25 = arith.constant 0 : index
      %c0_26 = arith.constant 0 : index
      %c0_27 = arith.constant 0 : index
      %28 = vector.load %arg6[%c0_25, %c0_26, %c0_27] : memref<4x256x64xf32, #tpu.memory_space<vmem>>, vector<1x256x64xf32>
      %29 = vector.shape_cast %28 : vector<1x256x64xf32> to vector<256x64xf32>
      %cst_28 = arith.constant dense<0.000000e+00> : vector<8x64xf32>
      %30 = tpu.matmul %27, %29, %cst_28 {dimension_numbers = #tpu.dot_dimension_numbers<[1], [0], [0], [1], [0, 0, 1, 1], [], []>} : vector<8x256xf32>, vector<256x64xf32>, vector<8x64xf32> -> vector<8x64xf32>
      %c0_29 = arith.constant 0 : index
      %c16 = arith.constant 16 : index
      %c0_30 = arith.constant 0 : index
      %31 = vector.load %arg7[%c0_29, %c16, %c0_30] : memref<1x48x64xf32, #tpu.memory_space<vmem>>, vector<1x8x64xf32>
      %32 = vector.shape_cast %31 : vector<1x8x64xf32> to vector<8x64xf32>
      %33 = vector.shape_cast %30 : vector<8x64xf32> to vector<1x8x64xf32>
      tpu.vector_store %arg7[%c0_29, %c16, %c0_30], %33 {strides = array<i32>} : memref<1x48x64xf32, #tpu.memory_space<vmem>>, vector<1x8x64xf32>,
      %c1 = arith.constant 1 : index
      %c0_31 = arith.constant 0 : index
      %c0_32 = arith.constant 0 : index
      %34 = vector.load %arg6[%c1, %c0_31, %c0_32] : memref<4x256x64xf32, #tpu.memory_space<vmem>>, vector<1x256x64xf32>
      %35 = vector.shape_cast %34 : vector<1x256x64xf32> to vector<256x64xf32>
      %cst_33 = arith.constant dense<0.000000e+00> : vector<8x64xf32>
      %36 = tpu.matmul %27, %35, %cst_33 {dimension_numbers = #tpu.dot_dimension_numbers<[1], [0], [0], [1], [0, 0, 1, 1], [], []>} : vector<8x256xf32>, vector<256x64xf32>, vector<8x64xf32> -> vector<8x64xf32>
      %c0_34 = arith.constant 0 : index
      %c24 = arith.constant 24 : index
      %c0_35 = arith.constant 0 : index
      %37 = vector.load %arg7[%c0_34, %c24, %c0_35] : memref<1x48x64xf32, #tpu.memory_space<vmem>>, vector<1x8x64xf32>
      %38 = vector.shape_cast %37 : vector<1x8x64xf32> to vector<8x64xf32>
      %39 = vector.shape_cast %36 : vector<8x64xf32> to vector<1x8x64xf32>
      tpu.vector_store %arg7[%c0_34, %c24, %c0_35], %39 {strides = array<i32>} : memref<1x48x64xf32, #tpu.memory_space<vmem>>, vector<1x8x64xf32>,
      %c2 = arith.constant 2 : index
      %c0_36 = arith.constant 0 : index
      %c0_37 = arith.constant 0 : index
      %40 = vector.load %arg6[%c2, %c0_36, %c0_37] : memref<4x256x64xf32, #tpu.memory_space<vmem>>, vector<1x256x64xf32>
      %41 = vector.shape_cast %40 : vector<1x256x64xf32> to vector<256x64xf32>
      %cst_38 = arith.constant dense<0.000000e+00> : vector<8x64xf32>
      %42 = tpu.matmul %27, %41, %cst_38 {dimension_numbers = #tpu.dot_dimension_numbers<[1], [0], [0], [1], [0, 0, 1, 1], [], []>} : vector<8x256xf32>, vector<256x64xf32>, vector<8x64xf32> -> vector<8x64xf32>
      %c0_39 = arith.constant 0 : index
      %c32 = arith.constant 32 : index
      %c0_40 = arith.constant 0 : index
      %43 = vector.load %arg7[%c0_39, %c32, %c0_40] : memref<1x48x64xf32, #tpu.memory_space<vmem>>, vector<1x8x64xf32>
      %44 = vector.shape_cast %43 : vector<1x8x64xf32> to vector<8x64xf32>
      %45 = vector.shape_cast %42 : vector<8x64xf32> to vector<1x8x64xf32>
      tpu.vector_store %arg7[%c0_39, %c32, %c0_40], %45 {strides = array<i32>} : memref<1x48x64xf32, #tpu.memory_space<vmem>>, vector<1x8x64xf32>,
      %c3 = arith.constant 3 : index
      %c0_41 = arith.constant 0 : index
      %c0_42 = arith.constant 0 : index
      %46 = vector.load %arg6[%c3, %c0_41, %c0_42] : memref<4x256x64xf32, #tpu.memory_space<vmem>>, vector<1x256x64xf32>
      %47 = vector.shape_cast %46 : vector<1x256x64xf32> to vector<256x64xf32>
      %cst_43 = arith.constant dense<0.000000e+00> : vector<8x64xf32>
      %48 = tpu.matmul %27, %47, %cst_43 {dimension_numbers = #tpu.dot_dimension_numbers<[1], [0], [0], [1], [0, 0, 1, 1], [], []>} : vector<8x256xf32>, vector<256x64xf32>, vector<8x64xf32> -> vector<8x64xf32>
      %c0_44 = arith.constant 0 : index
      %c40 = arith.constant 40 : index
      %c0_45 = arith.constant 0 : index
      %49 = vector.load %arg7[%c0_44, %c40, %c0_45] : memref<1x48x64xf32, #tpu.memory_space<vmem>>, vector<1x8x64xf32>
      %50 = vector.shape_cast %49 : vector<1x8x64xf32> to vector<8x64xf32>
      %51 = vector.shape_cast %48 : vector<8x64xf32> to vector<1x8x64xf32>
      tpu.vector_store %arg7[%c0_44, %c40, %c0_45], %51 {strides = array<i32>} : memref<1x48x64xf32, #tpu.memory_space<vmem>>, vector<1x8x64xf32>,
    } else {
    }
    return
  }
  func.func @transform_0(%arg0: i32, %arg1: i32) -> (i32, i32, i32) {
    %c0_i32 = arith.constant 0 : i32
    %c0_i32_0 = arith.constant 0 : i32
    %c0_i32_1 = arith.constant 0 : i32
    return %arg0, %c0_i32, %c0_i32_0 : i32, i32, i32
  }
  func.func @transform_1(%arg0: i32, %arg1: i32) -> (i32, i32, i32, i32) {
    %c0_i32 = arith.constant 0 : i32
    %c0_i32_0 = arith.constant 0 : i32
    %c0_i32_1 = arith.constant 0 : i32
    return %arg0, %arg1, %c0_i32, %c0_i32_0 : i32, i32, i32, i32
  }
  func.func @transform_2(%arg0: i32, %arg1: i32) -> (i32, i32, i32) {
    %c0_i32 = arith.constant 0 : i32
    %c0_i32_0 = arith.constant 0 : i32
    %c0_i32_1 = arith.constant 0 : i32
    return %arg1, %c0_i32, %c0_i32_0 : i32, i32, i32
  }
  func.func @transform_3(%arg0: i32, %arg1: i32) -> (i32, i32) {
    %c0_i32 = arith.constant 0 : i32
    %c0_i32_0 = arith.constant 0 : i32
    %c0_i32_1 = arith.constant 0 : i32
    return %c0_i32, %c0_i32_0 : i32, i32
  }
  func.func @transform_4(%arg0: i32, %arg1: i32) -> (i32, i32, i32) {
    %c0_i32 = arith.constant 0 : i32
    %c0_i32_0 = arith.constant 0 : i32
    %c0_i32_1 = arith.constant 0 : i32
    %c0_i32_2 = arith.constant 0 : i32
    return %c0_i32, %c0_i32_0, %c0_i32_1 : i32, i32, i32
  }
  func.func @transform_5(%arg0: i32, %arg1: i32) -> (i32, i32, i32) {
    %c0_i32 = arith.constant 0 : i32
    %c0_i32_0 = arith.constant 0 : i32
    %c0_i32_1 = arith.constant 0 : i32
    return %arg0, %c0_i32, %c0_i32_0 : i32, i32, i32
  }
}

</mosaic_0001>

<bundles_post_ra>
// kernel: router_v2_forward.1
= control target key start
LH: loop header
LB: loop body
LE: loop exit
PB: predicated region body
PF: predicated region fallthrough
CT: control target
= control target key end

     0   :  { %s1262_s18 = smov 0   ;;  %s1264_s19 = smov 0   ;;  %s1705_s0 = inlined_call_operand.vmem [shape: f32[2,16,64], index: 0, kind: input, shape index: {}]   ;;  %s1706_s1 = inlined_call_operand.vmem [shape: f32[2,1,4,256], index: 1, kind: input, shape index: {}]   ;;  %s1707_s2 = inlined_call_operand.vmem [shape: f32[1,8,4], index: 2, kind: input, shape index: {}]   ;;  %s1708_s3 = inlined_call_operand.vmem [shape: f32[8,1], index: 3, kind: input, shape index: {}]   ;;  %s1709_s4 = inlined_call_operand.vmem [shape: f32[4,256,64], index: 4, kind: input, shape index: {}]   ;;  %s1710_s5 = inlined_call_operand.vmem [shape: f32[2,48,64], index: 5, kind: output, shape index: {}]  }
   0x1   :  { %s1266_s20 = smov 0  }
   0x2 LB: > { %s27_s21 = sadd.s32 1, %s1224_s19  ;;  %p928_p0 = scmp.ge.s32.totalorder %s1228_s20, 1  ;;  %s1228_s20 = sphi %s1266_s20, %s15_s20   ;;  %s1224_s19 = sphi %s1264_s19, %s1712_s19   ;;  %s1220_s18 = sphi %s1262_s18, %s1711_s18  }
   0x3   : > { %p29_p1 = scmp.ge.s32.totalorder %s27_s21, 2  ;;  %p224_p2 = scmp.lt.s32.totalorder %s1228_s20, 3 }
   0x5   : > { %s1714_s21 = smov (%p29_p1, %s27_s21), 0  ;;  %p225_p3 = pnand %p928_p0, %p224_p2 }
   0x6   : > { %p265_p4 = scmp.lt.s32.totalorder (!%p225_p3), %s1220_s18, 1 }
   0x7   : > { %228 = sbr.rel (%p225_p3) target bundleno = 452 (0x1c4), region = 40 }
   0xc   : > { %v1230_v0 = vmov 0.0   ;;  %v1231_v1 = vmov 0   ;;  %v394_v2 = vld [vmem:[%s1708_s3] sm:$0xff]  ;;  %v439_v3 = vld [vmem:[%s1709_s4 + $0xf8] sm:$0xff]  ;;  %s1716_s18 = smov (!%p265_p4, %s1220_s18), 1  ;;  %v438_v5 = vld [vmem:[%s1709_s4 + $0xf0] sm:$0xff] }
   0xd   : > { %373 = vmatprep.mubr.f32.mxu0 %v1230_v0  ;;  %1204 = vset.pattern.permute.xlu0 %v1231_v1  ;;  %v423_v4 = vld [vmem:[%s1709_s4 + $0x78] sm:$0xff]  ;;  %v422_v6 = vld [vmem:[%s1709_s4 + $0x70] sm:$0xff]  ;;  %s1036_s7 = sshll.u32 %s1716_s18, 3  ;;  %v437_v7 = vld [vmem:[%s1709_s4 + $0xe8] sm:$0xff]  ;;  %vm304_vm0 = vcmask 1043456   ;;  %vm300_vm1 = vcmask 31744  }
   0xe   : > { %397 = vperm.xlu0 %1204, %v394_v2   ;;  %1037 = vmatprep.subr.mxu1 %v439_v3  ;;  %v421_v8 = vld [vmem:[%s1709_s4 + $0x68] sm:$0xff]  ;;  %s278_s14 = scalar_lea.vmem %s1706_s1, %s1036_s7  ;;  %v436_v9 = vld [vmem:[%s1709_s4 + $0xe0] sm:$0xff]  ;;  %v435_v13 = vld [vmem:[%s1709_s4 + $0xd8] sm:$0xff]  ;;  %s1035_s9 = sshll.u32 %s1716_s18, 4  ;;  %vm389_vm4 = vcmask 523264  }
   0xf   : > { %1038 = vmatpush3.msra.mxu1 %v423_v4  ;;  %v297_v10 = vld [vmem:[%s278_s14] sm:$0xff]  ;;  %v968_v15 = vld [vmem:[%s1709_s4 + $0x1f8] sm:$0xff]  ;;  %v967_v18 = vld [vmem:[%s1709_s4 + $0x1f0] sm:$0xff]  ;;  %s269_s12 = scalar_lea.vmem %s1705_s0, %s1035_s9  ;;  %s1177_s13 = smul.u32 48, %s1716_s18 }
  0x10   : > { %1039 = vmatprep.subr.mxu1 %v438_v5  ;;  %v299_v11 = vcombine.high %v297_v10, %v297_v10  ;;  %v420_v12 = vld [vmem:[%s1709_s4 + $0x60] sm:$0xff]  ;;  %v952_v16 = vld [vmem:[%s1709_s4 + $0x178] sm:$0xff]  ;;  %v434_v19 = vld [vmem:[%s1709_s4 + $0xd0] sm:$0xff] }
  0x11   : > { %1040 = vmatpush3.msra.mxu1 %v422_v6  ;;  %v296_v14 = vld [vmem:[%s1707_s2] sm:$0xff]  ;;  %v419_v17 = vld [vmem:[%s1709_s4 + $0x58] sm:$0xff]  ;;  %v951_v20 = vld [vmem:[%s1709_s4 + $0x170] sm:$0xff]  ;;  %s287_s16 = scalar_lea.vmem %s1710_s5, %s1177_s13 }
  0x12   : > { %1041 = vmatprep.subr.mxu1 %v437_v7  ;;  %934 = vmatprep.subr.msk.mxu0 %vm304_vm0, %v299_v11  ;;  %v418_v21 = vld [vmem:[%s1709_s4 + $0x50] sm:$0xff]  ;;  %v966_v22 = vld [vmem:[%s1709_s4 + $0x1e8] sm:$0xff]  ;;  %v965_v26 = vld [vmem:[%s1709_s4 + $0x1e0] sm:$0xff] }
  0x13   : > { %1042 = vmatpush3.msra.mxu1 %v421_v8  ;;  %935 = vmatpush1.msk.msra.mxu0 %vm304_vm0, %v297_v10  ;;  %v433_v23 = vld [vmem:[%s1709_s4 + $0xc8] sm:$0xff]  ;;  %v432_v27 = vld [vmem:[%s1709_s4 + $0xc0] sm:$0xff]  ;;  %v964_v30 = vld [vmem:[%s1709_s4 + $0x1d8] sm:$0xff] }
  0x14   : > { %1043 = vmatprep.subr.mxu1 %v436_v9  ;;  %936 = vmatmul.mubr.msk.f32.vlgmr.msra.gmra.mxu0 %vm300_vm1, %v296_v14  ;;  %v950_v24 = vld [vmem:[%s1709_s4 + $0x168] sm:$0xff]  ;;  %v949_v28 = vld [vmem:[%s1709_s4 + $0x160] sm:$0xff]  ;;  %v431_v31 = vld [vmem:[%s1709_s4 + $0xb8] sm:$0xff] }
  0x15   : > { %1044 = vmatpush3.msra.mxu1 %v420_v12  ;;  %1072 = vmatprep.subr.mxu0 %v968_v15  ;;  %v417_v25 = vld [vmem:[%s1709_s4 + $0x48] sm:$0xff]  ;;  %v416_v29 = vld [vmem:[%s1709_s4 + $0x40] sm:$0xff]  ;;  %v948_v32 = vld [vmem:[%s1709_s4 + $0x158] sm:$0xff] }
  0x16   : > { %1045 = vmatprep.subr.mxu1 %v435_v13  ;;  %1073 = vmatpush3.msra.mxu0 %v952_v16  ;;  %v415_v33 = vld [vmem:[%s1709_s4 + $0x38] sm:$0xff]  ;;  %v963_v34 = vld [vmem:[%s1709_s4 + $0x1d0] sm:$0xff]  ;;  %v962_v38 = vld [vmem:[%s1709_s4 + $0x1c8] sm:$0xff] }
  0x17   : > { %1046 = vmatpush3.msra.mxu1 %v419_v17  ;;  %1074 = vmatprep.subr.mxu0 %v967_v18  ;;  %v430_v35 = vld [vmem:[%s1709_s4 + $0xb0] sm:$0xff]  ;;  %v429_v39 = vld [vmem:[%s1709_s4 + $0xa8] sm:$0xff]  ;;  %v961_v42 = vld [vmem:[%s1709_s4 + $0x1c0] sm:$0xff] }
  0x18   : > { %1047 = vmatprep.subr.mxu1 %v434_v19  ;;  %1075 = vmatpush3.msra.mxu0 %v951_v20  ;;  %v947_v36 = vld [vmem:[%s1709_s4 + $0x150] sm:$0xff]  ;;  %v946_v40 = vld [vmem:[%s1709_s4 + $0x148] sm:$0xff]  ;;  %v428_v43 = vld [vmem:[%s1709_s4 + $0xa0] sm:$0xff] }
  0x19   : > { %1048 = vmatpush3.msra.mxu1 %v418_v21  ;;  %1076 = vmatprep.subr.mxu0 %v966_v22  ;;  %v414_v37 = vld [vmem:[%s1709_s4 + $0x30] sm:$0xff]  ;;  %v413_v41 = vld [vmem:[%s1709_s4 + $0x28] sm:$0xff]  ;;  %v945_v44 = vld [vmem:[%s1709_s4 + $0x140] sm:$0xff] }
  0x1a   : > { %1049 = vmatprep.subr.mxu1 %v433_v23  ;;  %1077 = vmatpush3.msra.mxu0 %v950_v24  ;;  %v412_v45 = vld [vmem:[%s1709_s4 + $0x20] sm:$0xff]  ;;  %v960_v46 = vld [vmem:[%s1709_s4 + $0x1b8] sm:$0xff]  ;;  %v959_v49 = vld [vmem:[%s1709_s4 + $0x1b0] sm:$0xff] }
  0x1b   : > { %1050 = vmatpush3.msra.mxu1 %v417_v25  ;;  %1078 = vmatprep.subr.mxu0 %v965_v26  ;;  %v427_v47 = vld [vmem:[%s1709_s4 + $0x98] sm:$0xff]  ;;  %v943_v50 = vld [vmem:[%s1709_s4 + $0x130] sm:$0xff]  ;;  %v958_v51 = vld [vmem:[%s1709_s4 + $0x1a8] sm:$0xff] }
  0x1c   : > { %1051 = vmatprep.subr.mxu1 %v432_v27  ;;  %1079 = vmatpush3.msra.mxu0 %v949_v28  ;;  %v944_v48 = vld [vmem:[%s1709_s4 + $0x138] sm:$0xff]  ;;  %v942_v52 = vld [vmem:[%s1709_s4 + $0x128] sm:$0xff]  ;;  %v957_v53 = vld [vmem:[%s1709_s4 + $0x1a0] sm:$0xff] }
  0x1d   : > { %1052 = vmatpush3.msra.mxu1 %v416_v29  ;;  %1080 = vmatprep.subr.mxu0 %v964_v30  ;;  %v941_v54 = vld [vmem:[%s1709_s4 + $0x120] sm:$0xff]  ;;  %v956_v55 = vld [vmem:[%s1709_s4 + $0x198] sm:$0xff]  ;;  %v426_v58 = vld [vmem:[%s1709_s4 + $0x90] sm:$0xff] }
  0x1e   : > { %1053 = vmatprep.subr.mxu1 %v431_v31  ;;  %1081 = vmatpush3.msra.mxu0 %v948_v32  ;;  %v411_v56 = vld [vmem:[%s1709_s4 + $0x18] sm:$0xff]  ;;  %v955_v59 = vld [vmem:[%s1709_s4 + $0x190] sm:$0xff]  ;;  %v425_v62 = vld [vmem:[%s1709_s4 + $0x88] sm:$0xff] }
  0x1f   : > { %1054 = vmatpush3.msra.mxu1 %v415_v33  ;;  %1082 = vmatprep.subr.mxu0 %v963_v34  ;;  %v940_v57 = vld [vmem:[%s1709_s4 + $0x118] sm:$0xff]  ;;  %v410_v60 = vld [vmem:[%s1709_s4 + $0x10] sm:$0xff]  ;;  %v954_v63 = vld [vmem:[%s1709_s4 + $0x188] sm:$0xff] }
  0x20   : > { %1055 = vmatprep.subr.mxu1 %v430_v35  ;;  %1083 = vmatpush3.msra.mxu0 %v947_v36  ;;  %v939_v61 = vld [vmem:[%s1709_s4 + $0x110] sm:$0xff]  ;;  %v409_v0 = vld [vmem:[%s1709_s4 + $0x8] sm:$0xff]  ;;  %v424_v2 = vld [vmem:[%s1709_s4 + $0x80] sm:$0xff] }
  0x21   : > { %1056 = vmatpush3.msra.mxu1 %v414_v37  ;;  %1084 = vmatprep.subr.mxu0 %v962_v38  ;;  %v938_v1 = vld [vmem:[%s1709_s4 + $0x108] sm:$0xff]  ;;  %v953_v3 = vld [vmem:[%s1709_s4 + $0x180] sm:$0xff]  ;;  %v1000_v6 = vld [vmem:[%s1709_s4 + $0x2f8] sm:$0xff] }
  0x22   : > { %1057 = vmatprep.subr.mxu1 %v429_v39  ;;  %1085 = vmatpush3.msra.mxu0 %v946_v40  ;;  %v408_v4 = vld [vmem:[%s1709_s4] sm:$0xff]  ;;  %v1032_v7 = vld [vmem:[%s1709_s4 + $0x3f8] sm:$0xff]  ;;  %v999_v19 = vld [vmem:[%s1709_s4 + $0x2f0] sm:$0xff] }
  0x23   : > { %1058 = vmatpush3.msra.mxu1 %v413_v41  ;;  %1086 = vmatprep.subr.mxu0 %v961_v42  ;;  %v937_v5 = vld [vmem:[%s1709_s4 + $0x100] sm:$0xff]  ;;  %v984_v16 = vld [vmem:[%s1709_s4 + $0x278] sm:$0xff]  ;;  %v1031_v20 = vld [vmem:[%s1709_s4 + $0x3f0] sm:$0xff] }
  0x24   : > { %1059 = vmatprep.subr.mxu1 %v428_v43  ;;  %1087 = vmatpush3.msra.mxu0 %v945_v44  ;;  %v1016_v17 = vld [vmem:[%s1709_s4 + $0x378] sm:$0xff]  ;;  %v983_v21 = vld [vmem:[%s1709_s4 + $0x270] sm:$0xff]  ;;  %v998_v23 = vld [vmem:[%s1709_s4 + $0x2e8] sm:$0xff] }
  0x25   : > { %1060 = vmatpush3.msra.mxu1 %v412_v45  ;;  %1088 = vmatprep.subr.mxu0 %v960_v46  ;;  %v1015_v22 = vld [vmem:[%s1709_s4 + $0x370] sm:$0xff]  ;;  %v1030_v24 = vld [vmem:[%s1709_s4 + $0x3e8] sm:$0xff]  ;;  %v997_v27 = vld [vmem:[%s1709_s4 + $0x2e0] sm:$0xff] }
  0x26   : > { %1061 = vmatprep.subr.mxu1 %v427_v47  ;;  %1089 = vmatpush3.msra.mxu0 %v944_v48  ;;  %v982_v25 = vld [vmem:[%s1709_s4 + $0x268] sm:$0xff]  ;;  %v1029_v28 = vld [vmem:[%s1709_s4 + $0x3e0] sm:$0xff]  ;;  %v996_v31 = vld [vmem:[%s1709_s4 + $0x2d8] sm:$0xff] }
  0x27   : > { %1090 = vmatprep.subr.mxu0 %v959_v49  ;;  %1062 = vmatpush3.msra.mxu1 %v411_v56  ;;  %v1014_v26 = vld [vmem:[%s1709_s4 + $0x368] sm:$0xff]  ;;  %v981_v29 = vld [vmem:[%s1709_s4 + $0x260] sm:$0xff]  ;;  %v1028_v32 = vld [vmem:[%s1709_s4 + $0x3d8] sm:$0xff] }
  0x28   : > { %1091 = vmatpush3.msra.mxu0 %v943_v50  ;;  %1063 = vmatprep.subr.mxu1 %v426_v58  ;;  %v1013_v30 = vld [vmem:[%s1709_s4 + $0x360] sm:$0xff]  ;;  %v980_v33 = vld [vmem:[%s1709_s4 + $0x258] sm:$0xff]  ;;  %v995_v35 = vld [vmem:[%s1709_s4 + $0x2d0] sm:$0xff] }
  0x29   : > { %1092 = vmatprep.subr.mxu0 %v958_v51  ;;  %1064 = vmatpush3.msra.mxu1 %v410_v60  ;;  %v1012_v34 = vld [vmem:[%s1709_s4 + $0x358] sm:$0xff]  ;;  %v1027_v36 = vld [vmem:[%s1709_s4 + $0x3d0] sm:$0xff]  ;;  %v994_v39 = vld [vmem:[%s1709_s4 + $0x2c8] sm:$0xff] }
  0x2a   : > { %1093 = vmatpush3.msra.mxu0 %v942_v52  ;;  %1065 = vmatprep.subr.mxu1 %v425_v62  ;;  %v979_v37 = vld [vmem:[%s1709_s4 + $0x250] sm:$0xff]  ;;  %v1026_v40 = vld [vmem:[%s1709_s4 + $0x3c8] sm:$0xff]  ;;  %v993_v43 = vld [vmem:[%s1709_s4 + $0x2c0] sm:$0xff] }
  0x2b   : > { %1094 = vmatprep.subr.mxu0 %v957_v53  ;;  %1066 = vmatpush3.msra.mxu1 %v409_v0  ;;  %v1011_v38 = vld [vmem:[%s1709_s4 + $0x350] sm:$0xff]  ;;  %v978_v41 = vld [vmem:[%s1709_s4 + $0x248] sm:$0xff]  ;;  %v1025_v44 = vld [vmem:[%s1709_s4 + $0x3c0] sm:$0xff] }
  0x2c   : > { %1095 = vmatpush3.msra.mxu0 %v941_v54  ;;  %1067 = vmatprep.subr.mxu1 %v424_v2  ;;  %v1010_v42 = vld [vmem:[%s1709_s4 + $0x348] sm:$0xff]  ;;  %v977_v45 = vld [vmem:[%s1709_s4 + $0x240] sm:$0xff]  ;;  %v992_v47 = vld [vmem:[%s1709_s4 + $0x2b8] sm:$0xff] }
  0x2d   : > { %1096 = vmatprep.subr.mxu0 %v956_v55  ;;  %1068 = vmatpush3.msra.mxu1 %v408_v4  ;;  %v1009_v46 = vld [vmem:[%s1709_s4 + $0x340] sm:$0xff]  ;;  %v1024_v48 = vld [vmem:[%s1709_s4 + $0x3b8] sm:$0xff]  ;;  %v991_v51 = vld [vmem:[%s1709_s4 + $0x2b0] sm:$0xff] }
  0x2e   : > { %1097 = vmatpush3.msra.mxu0 %v940_v57  ;;  %1107 = vmatprep.subr.mxu1 %v1000_v6  ;;  %v976_v49 = vld [vmem:[%s1709_s4 + $0x238] sm:$0xff]  ;;  %v1023_v52 = vld [vmem:[%s1709_s4 + $0x3b0] sm:$0xff]  ;;  %v990_v55 = vld [vmem:[%s1709_s4 + $0x2a8] sm:$0xff] }
  0x2f   : > { %1098 = vmatprep.subr.mxu0 %v955_v59  ;;  %v1008_v50 = vld [vmem:[%s1709_s4 + $0x338] sm:$0xff]  ;;  %v975_v53 = vld [vmem:[%s1709_s4 + $0x230] sm:$0xff]  ;;  %v1022_v56 = vld [vmem:[%s1709_s4 + $0x3a8] sm:$0xff] }
  0x30   : > { %1099 = vmatpush3.msra.mxu0 %v939_v61  ;;  %v1007_v54 = vld [vmem:[%s1709_s4 + $0x330] sm:$0xff]  ;;  %v974_v57 = vld [vmem:[%s1709_s4 + $0x228] sm:$0xff]  ;;  %v989_v59 = vld [vmem:[%s1709_s4 + $0x2a0] sm:$0xff] }
  0x31   : > { %1100 = vmatprep.subr.mxu0 %v954_v63  ;;  %v1006_v58 = vld [vmem:[%s1709_s4 + $0x328] sm:$0xff]  ;;  %v1021_v60 = vld [vmem:[%s1709_s4 + $0x3a0] sm:$0xff]  ;;  %v988_v63 = vld [vmem:[%s1709_s4 + $0x298] sm:$0xff] }
  0x32   : > { %1101 = vmatpush3.msra.mxu0 %v938_v1  ;;  %v973_v61 = vld [vmem:[%s1709_s4 + $0x220] sm:$0xff]  ;;  %v1020_v0 = vld [vmem:[%s1709_s4 + $0x398] sm:$0xff]  ;;  %v1019_v4 = vld [vmem:[%s1709_s4 + $0x390] sm:$0xff] }
  0x33   : > { %1102 = vmatprep.subr.mxu0 %v953_v3  ;;  %v1005_v62 = vld [vmem:[%s1709_s4 + $0x320] sm:$0xff]  ;;  %v972_v1 = vld [vmem:[%s1709_s4 + $0x218] sm:$0xff]  ;;  %v987_v3 = vld [vmem:[%s1709_s4 + $0x290] sm:$0xff] }
  0x34   : > { %1103 = vmatpush3.msra.mxu0 %v937_v5  ;;  %v1004_v2 = vld [vmem:[%s1709_s4 + $0x318] sm:$0xff]  ;;  %v971_v5 = vld [vmem:[%s1709_s4 + $0x210] sm:$0xff] }
  0x35   : > { %1142 = vmatprep.subr.mxu0 %v1032_v7  ;;  %v1003_v6 = vld [vmem:[%s1709_s4 + $0x310] sm:$0xff]  ;;  %v986_v7 = vld [vmem:[%s1709_s4 + $0x288] sm:$0xff] }
  0x89   : > { %v398_v8 = vpop.permute.xlu0 %397 }
  0xd4   : > { %v375_v9 = vpop.f32.mrf.mxu0 }
  0xd5   : > { %v400_v10 = vadd.f32 %v398_v8, %v375_v9  ;;  %v970_v9 = vld [vmem:[%s1709_s4 + $0x208] sm:$0xff] }
  0xd6   : > { %v377_v11 = vpop.f32.mrf.mxu0 }
  0xd7   : > { %v401_v12 = vadd.f32 %v398_v8, %v377_v11  ;;  %v404_v13 = vmul.f32 0.1, %v400_v10  ;;  %vm402_vm2 = vcmp.gt.f32.partialorder %v400_v10, 0.0  ;;  %v1018_v8 = vld [vmem:[%s1709_s4 + $0x388] sm:$0xff]  ;;  %v985_v11 = vld [vmem:[%s1709_s4 + $0x280] sm:$0xff] }
  0xd9   : > { %vm403_vm3 = vcmp.gt.f32.partialorder %v401_v12, 0.0  ;;  %v405_v14 = vmul.f32 0.1, %v401_v12  ;;  %v1496_v18 = vsel %vm402_vm2, %v400_v10, %v404_v13  ;;  %v1002_v10 = vld [vmem:[%s1709_s4 + $0x308] sm:$0xff]  ;;  %v969_v13 = vld [vmem:[%s1709_s4 + $0x200] sm:$0xff] }
  0xdb   : > { %v407_v15 = vsel %vm403_vm3, %v401_v12, %v405_v14  ;;  %v1017_v12 = vld [vmem:[%s1709_s4 + $0x380] sm:$0xff] }
  0xdc   : > { %504 = vmatprep.mubr.f32.mxu1 %v407_v15  ;;  %608 = vmatprep.mubr.f32.mxu0 %v407_v15  ;;  %v1001_v14 = vld [vmem:[%s1709_s4 + $0x300] sm:$0xff] }
  0xdd   : > { %505 = vmatmul.mubr.f32.vlgmr.msra.gmra.mxu1 %v1496_v18  ;;  %609 = vmatmul.mubr.f32.vlgmr.msra.gmra.mxu0 %v1496_v18 }
  0xde   : > { %1108 = vmatpush3.msra.mxu1 %v984_v16  ;;  %1143 = vmatpush3.msra.mxu0 %v1016_v17  ;;  %v388_v16 = vld [vmem:[%s269_s12 + $0x8] sm:$0xff] }
  0xdf   : > { %1109 = vmatprep.subr.mxu1 %v999_v19  ;;  %712 = vmatprep.mubr.f32.mxu1 %v407_v15  ;;  %391 = vst.msk [vmem:[%s287_s16 + $0x8] sm:$0xff] %vm389_vm4, %v388_v16 }
  0xe0   : > { %1144 = vmatprep.subr.mxu0 %v1031_v20  ;;  %816 = vmatprep.mubr.f32.mxu0 %v407_v15  ;;  %v387_v15 = vld [vmem:[%s269_s12] sm:$0xff] }
  0xe1   : > { %1110 = vmatpush3.msra.mxu1 %v983_v21  ;;  %1145 = vmatpush3.msra.mxu0 %v1015_v22  ;;  %390 = vst.msk [vmem:[%s287_s16] sm:$0xff] %vm389_vm4, %v387_v15 }
  0xe2   : > { %1111 = vmatprep.subr.mxu1 %v998_v23  ;;  %1146 = vmatprep.subr.mxu0 %v1030_v24 }
  0xe3   : > { %1112 = vmatpush3.msra.mxu1 %v982_v25  ;;  %1147 = vmatpush3.msra.mxu0 %v1014_v26 }
  0xe4   : > { %1113 = vmatprep.subr.mxu1 %v997_v27  ;;  %1148 = vmatprep.subr.mxu0 %v1029_v28 }
  0xe5   : > { %1114 = vmatpush3.msra.mxu1 %v981_v29  ;;  %1149 = vmatpush3.msra.mxu0 %v1013_v30 }
  0xe6   : > { %1115 = vmatprep.subr.mxu1 %v996_v31  ;;  %1150 = vmatprep.subr.mxu0 %v1028_v32 }
  0xe7   : > { %1116 = vmatpush3.msra.mxu1 %v980_v33  ;;  %1151 = vmatpush3.msra.mxu0 %v1012_v34 }
  0xe8   : > { %1117 = vmatprep.subr.mxu1 %v995_v35  ;;  %1152 = vmatprep.subr.mxu0 %v1027_v36 }
  0xe9   : > { %1118 = vmatpush3.msra.mxu1 %v979_v37  ;;  %1153 = vmatpush3.msra.mxu0 %v1011_v38 }
  0xea   : > { %1119 = vmatprep.subr.mxu1 %v994_v39  ;;  %1154 = vmatprep.subr.mxu0 %v1026_v40 }
  0xeb   : > { %1120 = vmatpush3.msra.mxu1 %v978_v41  ;;  %1155 = vmatpush3.msra.mxu0 %v1010_v42 }
  0xec   : > { %1121 = vmatprep.subr.mxu1 %v993_v43  ;;  %1156 = vmatprep.subr.mxu0 %v1025_v44 }
  0xed   : > { %1122 = vmatpush3.msra.mxu1 %v977_v45  ;;  %1157 = vmatpush3.msra.mxu0 %v1009_v46 }
  0xee   : > { %1123 = vmatprep.subr.mxu1 %v992_v47  ;;  %1158 = vmatprep.subr.mxu0 %v1024_v48 }
  0xef   : > { %1124 = vmatpush3.msra.mxu1 %v976_v49  ;;  %1159 = vmatpush3.msra.mxu0 %v1008_v50 }
  0xf0   : > { %1125 = vmatprep.subr.mxu1 %v991_v51  ;;  %1160 = vmatprep.subr.mxu0 %v1023_v52 }
  0xf1   : > { %1126 = vmatpush3.msra.mxu1 %v975_v53  ;;  %1161 = vmatpush3.msra.mxu0 %v1007_v54 }
  0xf2   : > { %1127 = vmatprep.subr.mxu1 %v990_v55  ;;  %1162 = vmatprep.subr.mxu0 %v1022_v56 }
  0xf3   : > { %1128 = vmatpush3.msra.mxu1 %v974_v57  ;;  %1163 = vmatpush3.msra.mxu0 %v1006_v58 }
  0xf4   : > { %1129 = vmatprep.subr.mxu1 %v989_v59  ;;  %1164 = vmatprep.subr.mxu0 %v1021_v60 }
  0xf5   : > { %1130 = vmatpush3.msra.mxu1 %v973_v61  ;;  %1165 = vmatpush3.msra.mxu0 %v1005_v62 }
  0xf6   : > { %1131 = vmatprep.subr.mxu1 %v988_v63  ;;  %1166 = vmatprep.subr.mxu0 %v1020_v0 }
  0xf7   : > { %1132 = vmatpush3.msra.mxu1 %v972_v1  ;;  %1167 = vmatpush3.msra.mxu0 %v1004_v2 }
  0xf8   : > { %1133 = vmatprep.subr.mxu1 %v987_v3  ;;  %1168 = vmatprep.subr.mxu0 %v1019_v4 }
  0xf9   : > { %1134 = vmatpush3.msra.mxu1 %v971_v5  ;;  %1169 = vmatpush3.msra.mxu0 %v1003_v6 }
  0xfa   : > { %1135 = vmatprep.subr.mxu1 %v986_v7  ;;  %1170 = vmatprep.subr.mxu0 %v1018_v8 }
  0xfb   : > { %1136 = vmatpush3.msra.mxu1 %v970_v9  ;;  %1171 = vmatpush3.msra.mxu0 %v1002_v10 }
  0xfc   : > { %1137 = vmatprep.subr.mxu1 %v985_v11  ;;  %1172 = vmatprep.subr.mxu0 %v1017_v12 }
  0xfd   : > { %1138 = vmatpush3.msra.mxu1 %v969_v13  ;;  %1173 = vmatpush3.msra.mxu0 %v1001_v14 }
  0xfe   : > { %713 = vmatmul.mubr.f32.vlgmr.msra.gmra.mxu1 %v1496_v18  ;;  %817 = vmatmul.mubr.f32.vlgmr.msra.gmra.mxu0 %v1496_v18 }
 0x19d   : > { %v1069_v17 = vpop.f32.mrf.mxu1  ;;  %v1104_v19 = vpop.f32.mrf.mxu0 }
 0x19f   : > { %v1070_v18 = vpop.f32.mrf.mxu1  ;;  %v1105_v20 = vpop.f32.mrf.mxu0 }
 0x1a0   : > { %v1071_v21 = vadd.f32 %v1070_v18, %v1069_v17  ;;  %v1106_v22 = vadd.f32 %v1105_v20, %v1104_v19 }
 0x1a2   : > { %510 = vst.msk [vmem:[%s287_s16 + $0x10] sm:$0xff] %vm389_vm4, %v1071_v21  ;;  %614 = vst.msk [vmem:[%s287_s16 + $0x18] sm:$0xff] %vm389_vm4, %v1106_v22 }
 0x1be   : > { %v1139_v23 = vpop.f32.mrf.mxu1  ;;  %v1174_v24 = vpop.f32.mrf.mxu0 }
 0x1c0   : > { %v1140_v25 = vpop.f32.mrf.mxu1  ;;  %v1175_v26 = vpop.f32.mrf.mxu0 }
 0x1c1   : > { %v1141_v27 = vadd.f32 %v1140_v25, %v1139_v23  ;;  %v1176_v28 = vadd.f32 %v1175_v26, %v1174_v24 }
 0x1c3   : > { %718 = vst.msk [vmem:[%s287_s16 + $0x20] sm:$0xff] %vm389_vm4, %v1141_v27  ;;  %822 = vst.msk [vmem:[%s287_s16 + $0x28] sm:$0xff] %vm389_vm4, %v1176_v28 }
 0x1c4 PF: > { %s15_s20 = sadd.s32 1, %s1228_s20   ;;  %s1711_s18 = smov %s1224_s19 }
 0x1c5   : > { %p12_p5 = scmp.ge.s32.totalorder %s15_s20, 4   ;;  %s1712_s19 = smov %s1714_s21 }
 0x1c7   :  { %14 = sbr.rel (!%p12_p5) target bundleno = 2 (0x2), region = 87 }

</bundles_post_ra>
